<compile_context>
chip_gen: v5e
topology: v5e:2x2
jax: 0.10.0
libtpu: 0.0.40
codegen_flags: <defaults>
</compile_context>

<pallas_src>
import functools

import jax
import jax.numpy as jnp
from jax.experimental import pallas as pl
from jax.experimental.pallas import tpu as pltpu


def relu_network_kernel(x_ref, w1_ref, b1_ref, w2_ref, b2_ref, o_ref, *,
                        m_out, pack):
    # Layer 1 on the MXU with f32 accumulation (packed K = pack * input_sz).
    h = jnp.dot(x_ref[...], w1_ref[...], preferred_element_type=jnp.float32)
    h = jnp.maximum(h + b1_ref[...], 0.0)

    # Layer 2 (tiny, f32).  Class c of packed sub-row j lives in lane c*pack+j.
    logits = jnp.dot(h, w2_ref[...], preferred_element_type=jnp.float32)
    logits = logits + b2_ref[...]

    if m_out == 2:
        # Exact 2-class softmax (no approx reciprocal): rows sum to 1 to ~1 ulp.
        l0 = logits[:, 0:pack]
        l1 = logits[:, pack:2 * pack]
        p1 = 1.0 / (1.0 + jnp.exp(l0 - l1))
        p0 = 1.0 - p1
        out = jnp.concatenate([p0, p1], axis=-1)
    else:
        # Generic exact softmax over the class-major lane groups.
        cls = [logits[:, c * pack:(c + 1) * pack] for c in range(m_out)]
        mx = cls[0]
        for c_val in cls[1:]:
            mx = jnp.maximum(mx, c_val)
        es = [jnp.exp(c_val - mx) for c_val in cls]
        denom = es[0]
        for e in es[1:]:
            denom = denom + e
        inv = 1.0 / denom  # exact divide keeps normalization tight
        out = jnp.concatenate([e * inv for e in es], axis=-1)

    o_ref[...] = out.astype(o_ref.dtype)


def _round_up(n, k):
    return -(-n // k) * k


def _round_down(n, k):
    return (n // k) * k


def relu_network(x, w1, b1, w2, b2, *, pack=8, tile_rows=None,
                 x_mib_per_step=4.0, vmem_limit_bytes=None):
    """x: [B, input_sz], w1: [input_sz, width], b1: [1, width],
    w2: [width, m], b2: [1, m]  ->  [B, m] float32 softmax probabilities."""
    B, input_sz = x.shape
    width = w1.shape[1]
    m_out = w2.shape[1]

    in_dtype = x.dtype
    in_itemsize = jnp.dtype(in_dtype).itemsize

    # Pack only when the feature dim is small enough for it to pay off.
    if pack * input_sz > 1024 or B < pack:
        pack = 1

    # Pad batch only to a multiple of `pack` (<= pack-1 zero rows; negligible
    # compared to the old full pad-to-tile HBM pass).
    b_pad = _round_up(B, pack)
    if b_pad != B:
        x = jnp.concatenate(
            [x, jnp.zeros((b_pad - B, input_sz), in_dtype)], axis=0)

    rows = b_pad // pack             # packed (streamed) rows
    k1 = pack * input_sz             # packed contraction dim (128 for 8*16)
    n1 = pack * width                # packed hidden dim
    n2 = pack * m_out                # packed output dim

    # Row-major reshape of a contiguous array == bitcast: no extra HBM traffic.
    xp = x.reshape(rows, k1)

    # Block-diagonal packed weights, built once; VMEM-resident in the kernel.
    eye = jnp.eye(pack, dtype=jnp.float32)
    w1f = w1.astype(jnp.float32)
    w2f = w2.astype(jnp.float32)
    w1p = jnp.kron(eye, w1f).astype(in_dtype)                               # [k1, n1]
    b1p = jnp.tile(b1.astype(jnp.float32).reshape(1, width), (1, pack))     # [1, n1]
    w2p = jnp.concatenate(
        [jnp.kron(eye, w2f[:, c:c + 1]) for c in range(m_out)], axis=1)     # [n1, n2]
    b2p = jnp.repeat(b2.astype(jnp.float32).reshape(1, m_out), pack, axis=1)  # [1, n2]

    # --- tile selection with (8,128)-padded VMEM accounting ------------------
    sub_align = 8 if in_itemsize >= 4 else 16
    lane_in = _round_up(k1, 128)
    lane_n1 = _round_up(n1, 128)
    lane_out = _round_up(n2, 128)
    # Streamed (double-buffered) x + out blocks, bytes per packed row:
    stream_per_row = 2 * (lane_in * in_itemsize + lane_out * 4)
    # Resident (still double-buffered by the pipeline) weight blocks:
    resident = 2 * (_round_up(k1, sub_align) * lane_n1 * in_itemsize   # W1p
                    + _round_up(n1, 8) * lane_out * 4                  # W2p
                    + 8 * lane_n1 * 4 + 8 * lane_out * 4)              # b1p, b2p

    if vmem_limit_bytes is None:
        budget = 14 * 1024 * 1024      # safe under v5e's 16 MiB default scope
    else:
        budget = int(vmem_limit_bytes * 0.85)
    budget = max(budget - resident, stream_per_row * sub_align)
    max_rows = max(sub_align, _round_down(budget // stream_per_row, sub_align))

    if tile_rows is None:
        target_bytes = int(x_mib_per_step * 1024 * 1024)
        tile_rows = max(sub_align, target_bytes // max(1, k1 * in_itemsize))
    tile_rows = min(tile_rows, max_rows)
    if tile_rows >= rows:
        tile_rows = rows               # single step; full-dim block is legal
    else:
        tile_rows = max(sub_align, _round_down(tile_rows, sub_align))

    grid = (pl.cdiv(rows, tile_rows),)  # ragged last block handled by Pallas

    cost = pl.CostEstimate(
        flops=2 * rows * (k1 * n1 + n1 * n2),
        transcendentals=rows * n2,
        bytes_accessed=(rows * k1 * in_itemsize + rows * n2 * 4
                        + k1 * n1 * in_itemsize + n1 * n2 * 4
                        + (n1 + n2) * 4),
    )

    kernel = functools.partial(relu_network_kernel, m_out=m_out, pack=pack)

    out_p = pl.pallas_call(
        kernel,
        out_shape=jax.ShapeDtypeStruct((rows, n2), jnp.float32),
        grid=grid,
        in_specs=[
            pl.BlockSpec((tile_rows, k1), lambda i: (i, 0)),   # streamed x tile
            pl.BlockSpec((k1, n1), lambda i: (0, 0)),          # resident W1p
            pl.BlockSpec((1, n1), lambda i: (0, 0)),           # resident b1p
            pl.BlockSpec((n1, n2), lambda i: (0, 0)),          # resident W2p
            pl.BlockSpec((1, n2), lambda i: (0, 0)),           # resident b2p
        ],
        out_specs=pl.BlockSpec((tile_rows, n2), lambda i: (i, 0)),
        compiler_params=pltpu.CompilerParams(
            dimension_semantics=("parallel",),   # megacore-shard batch tiles
            vmem_limit_bytes=vmem_limit_bytes),
        cost_estimate=cost,
    )(xp, w1p, b1p, w2p, b2p)

    # Unpack [rows, m*pack] (class-major lanes) -> [B, m].  Tiny array; cheap.
    out = out_p.reshape(rows, m_out, pack).transpose(0, 2, 1).reshape(b_pad, m_out)
    return out[:B]


def init_params(key, input_sz, width, m=2):
    """Deterministic init mirroring nn.Linear shapes (weights stored [in, out])."""
    k1, k2, k3, k4 = jax.random.split(key, 4)
    bound1 = 1.0 / jnp.sqrt(input_sz)
    bound2 = 1.0 / jnp.sqrt(width)
    w1 = jax.random.uniform(k1, (input_sz, width), jnp.float32, -bound1, bound1)
    b1 = jax.random.uniform(k2, (1, width), jnp.float32, -bound1, bound1)
    w2 = jax.random.uniform(k3, (width, m), jnp.float32, -bound2, bound2)
    b2 = jax.random.uniform(k4, (1, m), jnp.float32, -bound2, bound2)
    return w1, b1, w2, b2


if __name__ == "__main__":
    key = jax.random.PRNGKey(0)
    k_x, k_p = jax.random.split(key)

    batch, input_sz, width, m = 200, 16, 32, 2
    x = jax.random.normal(k_x, (batch, input_sz), jnp.float32)
    w1, b1, w2, b2 = init_params(k_p, input_sz, width, m)

    # Pure-JAX reference.
    ref = jax.nn.softmax(jnp.maximum(x @ w1 + b1, 0.0) @ w2 + b2, axis=1)

    # Default path: single grid step at this (small) size.
    out = jax.block_until_ready(relu_network(x, w1, b1, w2, b2))
    assert out.shape == (batch, m)
    assert jnp.allclose(out, ref, atol=5e-3, rtol=5e-3)
    # Exact 2-class softmax -> rows sum to 1 to ~1 ulp.
    assert jnp.allclose(out.sum(axis=1), 1.0, atol=1e-3)

    # Small explicit tile: multi-step grid + ragged last block (25 packed rows).
    out2 = jax.block_until_ready(relu_network(x, w1, b1, w2, b2, tile_rows=8))
    assert out2.shape == (batch, m)
    assert jnp.allclose(out2, ref, atol=5e-3, rtol=5e-3)
    assert jnp.allclose(out2.sum(axis=1), 1.0, atol=1e-3)

    # bf16 stream: only when x already lives in bf16 upstream (no wrapper cast).
    xb = x.astype(jnp.bfloat16)
    out_b = jax.block_until_ready(relu_network(xb, w1, b1, w2, b2))
    xbf = xb.astype(jnp.float32)
    w1bf = w1.astype(jnp.bfloat16).astype(jnp.float32)
    ref_b = jax.nn.softmax(jnp.maximum(xbf @ w1bf + b1, 0.0) @ w2 + b2, axis=1)
    assert out_b.shape == (batch, m)
    assert jnp.allclose(out_b, ref_b, atol=2e-2, rtol=2e-2)
    assert jnp.allclose(out_b.sum(axis=1), 1.0, atol=1e-3)

    print("KERNEL_OK")
</pallas_src>

<mosaic_0001>
module attributes {stable_mosaic.version = 11 : i64} {
  func.func @relu_network_kernel(%arg0: i32, %arg1: memref<25x128xf32, #tpu.memory_space<vmem>>, %arg2: memref<128x256xf32, #tpu.memory_space<vmem>>, %arg3: memref<1x256xf32, #tpu.memory_space<vmem>>, %arg4: memref<256x16xf32, #tpu.memory_space<vmem>>, %arg5: memref<1x16xf32, #tpu.memory_space<vmem>>, %arg6: memref<25x16xf32, #tpu.memory_space<vmem>>) attributes {dimension_semantics = [#tpu.dimension_semantics<parallel>], iteration_bounds = array<i64: 1>, scalar_prefetch = 0 : i64, scratch_operands = 0 : i64, tpu.core_type = #tpu.core_type<tc>, window_params = [{transform_indices = @transform_0, window_bounds = array<i64: 25, 128>}, {pipeline_mode = #tpu.pipeline_mode<synchronous>, transform_indices = @transform_1, window_bounds = array<i64: 128, 256>}, {pipeline_mode = #tpu.pipeline_mode<synchronous>, transform_indices = @transform_2, window_bounds = array<i64: 1, 256>}, {pipeline_mode = #tpu.pipeline_mode<synchronous>, transform_indices = @transform_3, window_bounds = array<i64: 256, 16>}, {pipeline_mode = #tpu.pipeline_mode<synchronous>, transform_indices = @transform_4, window_bounds = array<i64: 1, 16>}, {transform_indices = @transform_5, window_bounds = array<i64: 25, 16>}]} {
    %c0 = arith.constant 0 : index
    %c0_0 = arith.constant 0 : index
    %0 = vector.load %arg1[%c0, %c0_0] : memref<25x128xf32, #tpu.memory_space<vmem>>, vector<25x128xf32>
    %c0_1 = arith.constant 0 : index
    %c0_2 = arith.constant 0 : index
    %1 = vector.load %arg2[%c0_1, %c0_2] : memref<128x256xf32, #tpu.memory_space<vmem>>, vector<128x256xf32>
    %cst = arith.constant dense<0.000000e+00> : vector<25x256xf32>
    %2 = tpu.matmul %0, %1, %cst {dimension_numbers = #tpu.dot_dimension_numbers<[1], [0], [0], [1], [0, 0, 1, 1], [], []>} : vector<25x128xf32>, vector<128x256xf32>, vector<25x256xf32> -> vector<25x256xf32>
    %c0_3 = arith.constant 0 : index
    %c0_4 = arith.constant 0 : index
    %3 = vector.load %arg3[%c0_3, %c0_4] : memref<1x256xf32, #tpu.memory_space<vmem>>, vector<1x256xf32>
    %4 = vector.broadcast %3 : vector<1x256xf32> to vector<25x256xf32>
    %5 = arith.addf %2, %4 : vector<25x256xf32>
    %cst_5 = arith.constant 0.000000e+00 : f32
    %6 = vector.broadcast %cst_5 : f32 to vector<25x256xf32>
    %7 = arith.maximumf %5, %6 : vector<25x256xf32>
    %c0_6 = arith.constant 0 : index
    %c0_7 = arith.constant 0 : index
    %8 = vector.load %arg4[%c0_6, %c0_7] : memref<256x16xf32, #tpu.memory_space<vmem>>, vector<256x16xf32>
    %cst_8 = arith.constant dense<0.000000e+00> : vector<25x16xf32>
    %9 = tpu.matmul %7, %8, %cst_8 {dimension_numbers = #tpu.dot_dimension_numbers<[1], [0], [0], [1], [0, 0, 1, 1], [], []>} : vector<25x256xf32>, vector<256x16xf32>, vector<25x16xf32> -> vector<25x16xf32>
    %c0_9 = arith.constant 0 : index
    %c0_10 = arith.constant 0 : index
    %10 = vector.load %arg5[%c0_9, %c0_10] : memref<1x16xf32, #tpu.memory_space<vmem>>, vector<1x16xf32>
    %11 = vector.broadcast %10 : vector<1x16xf32> to vector<25x16xf32>
    %12 = arith.addf %9, %11 : vector<25x16xf32>
    %13 = vector.extract_strided_slice %12 {offsets = [0, 0], sizes = [25, 8], strides = [1, 1]} : vector<25x16xf32> to vector<25x8xf32>
    %14 = vector.extract_strided_slice %12 {offsets = [0, 8], sizes = [25, 8], strides = [1, 1]} : vector<25x16xf32> to vector<25x8xf32>
    %15 = arith.subf %13, %14 : vector<25x8xf32>
    %16 = math.exp %15 : vector<25x8xf32>
    %cst_11 = arith.constant 1.000000e+00 : f32
    %17 = vector.broadcast %cst_11 : f32 to vector<25x8xf32>
    %18 = arith.addf %17, %16 : vector<25x8xf32>
    %cst_12 = arith.constant 1.000000e+00 : f32
    %19 = vector.broadcast %cst_12 : f32 to vector<25x8xf32>
    %20 = arith.divf %19, %18 : vector<25x8xf32>
    %cst_13 = arith.constant 1.000000e+00 : f32
    %21 = vector.broadcast %cst_13 : f32 to vector<25x8xf32>
    %22 = arith.subf %21, %20 : vector<25x8xf32>
    %23 = tpu.concatenate %22, %20 in 1 : vector<25x8xf32>, vector<25x8xf32> -> vector<25x16xf32>
    %c0_14 = arith.constant 0 : index
    %c0_15 = arith.constant 0 : index
    %24 = vector.load %arg6[%c0_14, %c0_15] : memref<25x16xf32, #tpu.memory_space<vmem>>, vector<25x16xf32>
    tpu.vector_store %arg6[%c0_14, %c0_15], %23 {strides = array<i32>} : memref<25x16xf32, #tpu.memory_space<vmem>>, vector<25x16xf32>,
    return
  }
  func.func @transform_0(%arg0: i32) -> (i32, i32) {
    %c0_i32 = arith.constant 0 : i32
    %c0_i32_0 = arith.constant 0 : i32
    return %arg0, %c0_i32 : i32, i32
  }
  func.func @transform_1(%arg0: i32) -> (i32, i32) {
    %c0_i32 = arith.constant 0 : i32
    %c0_i32_0 = arith.constant 0 : i32
    %c0_i32_1 = arith.constant 0 : i32
    return %c0_i32, %c0_i32_0 : i32, i32
  }
  func.func @transform_2(%arg0: i32) -> (i32, i32) {
    %c0_i32 = arith.constant 0 : i32
    %c0_i32_0 = arith.constant 0 : i32
    %c0_i32_1 = arith.constant 0 : i32
    return %c0_i32, %c0_i32_0 : i32, i32
  }
  func.func @transform_3(%arg0: i32) -> (i32, i32) {
    %c0_i32 = arith.constant 0 : i32
    %c0_i32_0 = arith.constant 0 : i32
    %c0_i32_1 = arith.constant 0 : i32
    return %c0_i32, %c0_i32_0 : i32, i32
  }
  func.func @transform_4(%arg0: i32) -> (i32, i32) {
    %c0_i32 = arith.constant 0 : i32
    %c0_i32_0 = arith.constant 0 : i32
    %c0_i32_1 = arith.constant 0 : i32
    return %c0_i32, %c0_i32_0 : i32, i32
  }
  func.func @transform_5(%arg0: i32) -> (i32, i32) {
    %c0_i32 = arith.constant 0 : i32
    %c0_i32_0 = arith.constant 0 : i32
    return %arg0, %c0_i32 : i32, i32
  }
}

</mosaic_0001>

<bundles_post_ra>
// kernel: tpu_custom_call.1
= control target key start
LH: loop header
LB: loop body
LE: loop exit
PB: predicated region body
PF: predicated region fallthrough
CT: control target
= control target key end

     0   :  { %10 = vsyncpa [#allocation3], 0  ;;  %s410_s21 = smov [#allocation2]   ;;  %s673_s0 = inlined_call_operand.vmem [shape: f32[25,128], index: 0, kind: input, shape index: {}]   ;;  %s674_s1 = inlined_call_operand.vmem [shape: f32[128,256], index: 1, kind: input, shape index: {}]   ;;  %s675_s2 = inlined_call_operand.hbm [shape: f32[1,256], index: 2, kind: input, shape index: {}]   ;;  %s676_s3 = inlined_call_operand.vmem [shape: f32[256,16], index: 3, kind: input, shape index: {}]   ;;  %s677_s4 = inlined_call_operand.vmem [shape: f32[1,16], index: 4, kind: input, shape index: {}]   ;;  %s678_s5 = inlined_call_operand.vmem [shape: f32[25,16], index: 5, kind: output, shape index: {}]  }
   0x1   :  { %s20_s20 = sshll.u32 %s675_s2, 4  ;;  %s22_s22 = sshll.u32 %s410_s21, 4  ;;  %s21_s20 = int_to_ptr.hbm [resolvable:$true] %s20_s20  ;;  %s23_s22 = int_to_ptr.vmem [resolvable:$true] %s22_s22 }
   0x2   :  { %25 = dma.hbm_to_vmem [thread:$0]  %s21_s20, 32, %s23_s22, [#allocation3]  }
   0x3   :  { %408 = dma.done.wait [#allocation3], 32  }
   0x4   :  { %409 = vsyncadd [#allocation3], 4294967264  ;;  %v68_v0 = vld [vmem:[%s674_s1 + $0xf0] sm:$0xff]  ;;  %v66_v1 = vld [vmem:[%s674_s1 + $0xe0] sm:$0xff] }
   0x5   :  { %v69_v2 = vld [vmem:[%s674_s1 + $0xf8] sm:$0xff]  ;;  %76 = vmatpush.msra.mxu0 %v68_v0  ;;  %v67_v3 = vld [vmem:[%s674_s1 + $0xe8] sm:$0xff]  ;;  %v64_v4 = vld [vmem:[%s674_s1 + $0xd0] sm:$0xff] }
   0x6   :  { %105 = vmatpush.msra.mxu1 %v69_v2  ;;  %v65_v5 = vld [vmem:[%s674_s1 + $0xd8] sm:$0xff]  ;;  %v62_v6 = vld [vmem:[%s674_s1 + $0xc0] sm:$0xff]  ;;  %v63_v7 = vld [vmem:[%s674_s1 + $0xc8] sm:$0xff] }
   0x7   :  { %77 = vmatpush.msra.mxu0 %v66_v1  ;;  %v60_v8 = vld [vmem:[%s674_s1 + $0xb0] sm:$0xff]  ;;  %v61_v9 = vld [vmem:[%s674_s1 + $0xb8] sm:$0xff]  ;;  %v58_v10 = vld [vmem:[%s674_s1 + $0xa0] sm:$0xff] }
   0x8   :  { %106 = vmatpush.msra.mxu1 %v67_v3  ;;  %v59_v11 = vld [vmem:[%s674_s1 + $0xa8] sm:$0xff]  ;;  %v56_v12 = vld [vmem:[%s674_s1 + $0x90] sm:$0xff]  ;;  %v57_v13 = vld [vmem:[%s674_s1 + $0x98] sm:$0xff] }
   0x9   :  { %78 = vmatpush.msra.mxu0 %v64_v4  ;;  %v54_v14 = vld [vmem:[%s674_s1 + $0x80] sm:$0xff]  ;;  %v55_v15 = vld [vmem:[%s674_s1 + $0x88] sm:$0xff]  ;;  %v52_v16 = vld [vmem:[%s674_s1 + $0x70] sm:$0xff] }
   0xa   :  { %107 = vmatpush.msra.mxu1 %v65_v5  ;;  %v53_v17 = vld [vmem:[%s674_s1 + $0x78] sm:$0xff]  ;;  %v50_v18 = vld [vmem:[%s674_s1 + $0x60] sm:$0xff]  ;;  %v51_v19 = vld [vmem:[%s674_s1 + $0x68] sm:$0xff] }
   0xb   :  { %79 = vmatpush.msra.mxu0 %v62_v6  ;;  %v48_v20 = vld [vmem:[%s674_s1 + $0x50] sm:$0xff]  ;;  %v49_v21 = vld [vmem:[%s674_s1 + $0x58] sm:$0xff]  ;;  %v46_v22 = vld [vmem:[%s674_s1 + $0x40] sm:$0xff] }
   0xc   :  { %108 = vmatpush.msra.mxu1 %v63_v7  ;;  %v47_v23 = vld [vmem:[%s674_s1 + $0x48] sm:$0xff]  ;;  %v44_v24 = vld [vmem:[%s674_s1 + $0x30] sm:$0xff]  ;;  %v45_v25 = vld [vmem:[%s674_s1 + $0x38] sm:$0xff] }
   0xd   :  { %80 = vmatpush.msra.mxu0 %v60_v8  ;;  %v42_v26 = vld [vmem:[%s674_s1 + $0x20] sm:$0xff]  ;;  %v43_v27 = vld [vmem:[%s674_s1 + $0x28] sm:$0xff]  ;;  %v157_v28 = vld [vmem:[%s676_s3 + $0x78] sm:$0xff] }
   0xe   :  { %109 = vmatpush.msra.mxu1 %v61_v9  ;;  %v173_v29 = vld [vmem:[%s676_s3 + $0xf8] sm:$0xff]  ;;  %v156_v30 = vld [vmem:[%s676_s3 + $0x70] sm:$0xff]  ;;  %178 = vmatpush.msra.mxu2 %v157_v28  ;;  %v155_v34 = vld [vmem:[%s676_s3 + $0x68] sm:$0xff] }
   0xf   :  { %81 = vmatpush.msra.mxu0 %v58_v10  ;;  %v172_v31 = vld [vmem:[%s676_s3 + $0xf0] sm:$0xff]  ;;  %v41_v33 = vld [vmem:[%s674_s1 + $0x18] sm:$0xff]  ;;  %207 = vmatpush.msra.mxu3 %v173_v29  ;;  %v171_v35 = vld [vmem:[%s676_s3 + $0xe8] sm:$0xff] }
  0x10   :  { %110 = vmatpush.msra.mxu1 %v59_v11  ;;  %v40_v32 = vld [vmem:[%s674_s1 + $0x10] sm:$0xff]  ;;  %v38_v36 = vld [vmem:[%s674_s1] sm:$0xff]  ;;  %v39_v37 = vld [vmem:[%s674_s1 + $0x8] sm:$0xff]  ;;  %179 = vmatpush.msra.mxu2 %v156_v30  ;;  %s411_s1 = smov 120  }
  0x11   :  { %82 = vmatpush.msra.mxu0 %v56_v12  ;;  %208 = vmatpush.msra.mxu3 %v172_v31  ;;  %v34_v38 = vld [vmem:[%s673_s0] sm:$0xff]  ;;  %v153_v41 = vld [vmem:[%s676_s3 + $0x58] sm:$0xff]  ;;  %v152_v43 = vld [vmem:[%s676_s3 + $0x50] sm:$0xff] }
  0x12   :  { %111 = vmatpush.msra.mxu1 %v57_v13  ;;  %180 = vmatpush.msra.mxu2 %v155_v34  ;;  %v154_v39 = vld [vmem:[%s676_s3 + $0x60] sm:$0xff]  ;;  %v169_v42 = vld [vmem:[%s676_s3 + $0xd8] sm:$0xff]  ;;  %v168_v44 = vld [vmem:[%s676_s3 + $0xd0] sm:$0xff] }
  0x13   :  { %83 = vmatpush.msra.mxu0 %v54_v14  ;;  %209 = vmatpush.msra.mxu3 %v171_v35  ;;  %v170_v40 = vld [vmem:[%s676_s3 + $0xe0] sm:$0xff]  ;;  %v151_v45 = vld [vmem:[%s676_s3 + $0x48] sm:$0xff]  ;;  %v149_v50 = vld [vmem:[%s676_s3 + $0x38] sm:$0xff] }
  0x14   :  { %112 = vmatpush.msra.mxu1 %v55_v15  ;;  %181 = vmatpush.msra.mxu2 %v154_v39  ;;  %v167_v46 = vld [vmem:[%s676_s3 + $0xc8] sm:$0xff]  ;;  %v150_v48 = vld [vmem:[%s676_s3 + $0x40] sm:$0xff]  ;;  %v165_v51 = vld [vmem:[%s676_s3 + $0xb8] sm:$0xff] }
  0x15   :  { %84 = vmatpush.msra.mxu0 %v52_v16  ;;  %210 = vmatpush.msra.mxu3 %v170_v40  ;;  %v35_v47 = vld [vmem:[%s673_s0 + $0x8] sm:$0xff]  ;;  %v166_v49 = vld [vmem:[%s676_s3 + $0xc0] sm:$0xff]  ;;  %v148_v52 = vld [vmem:[%s676_s3 + $0x30] sm:$0xff] }
  0x16   :  { %113 = vmatpush.msra.mxu1 %v53_v17  ;;  %182 = vmatpush.msra.mxu2 %v153_v41  ;;  %v164_v53 = vld [vmem:[%s676_s3 + $0xb0] sm:$0xff]  ;;  %v147_v54 = vld [vmem:[%s676_s3 + $0x28] sm:$0xff]  ;;  %v146_v57 = vld [vmem:[%s676_s3 + $0x20] sm:$0xff] }
  0x17   :  { %85 = vmatpush.msra.mxu0 %v50_v18  ;;  %211 = vmatpush.msra.mxu3 %v169_v42  ;;  %v163_v55 = vld [vmem:[%s676_s3 + $0xa8] sm:$0xff]  ;;  %v36_v56 = vld [vmem:[%s673_s0 + $0x10] sm:$0xff]  ;;  %v162_v58 = vld [vmem:[%s676_s3 + $0xa0] sm:$0xff] }
  0x18   :  { %114 = vmatpush.msra.mxu1 %v51_v19  ;;  %183 = vmatpush.msra.mxu2 %v152_v43  ;;  %v145_v59 = vld [vmem:[%s676_s3 + $0x18] sm:$0xff]  ;;  %v144_v61 = vld [vmem:[%s676_s3 + $0x10] sm:$0xff]  ;;  %v143_v63 = vld [vmem:[%s676_s3 + $0x8] sm:$0xff] }
  0x19   :  { %86 = vmatpush.msra.mxu0 %v48_v20  ;;  %212 = vmatpush.msra.mxu3 %v168_v44  ;;  %v37_v60 = vld [vmem:[%s673_s0 + $0x18] sm:$0x1]  ;;  %v160_v0 = vld [vmem:[%s676_s3 + $0x90] sm:$0xff]  ;;  %v142_v1 = vld [vmem:[%s676_s3] sm:$0xff] }
  0x1a   :  { %115 = vmatpush.msra.mxu1 %v49_v21  ;;  %184 = vmatpush.msra.mxu2 %v151_v45  ;;  %v161_v62 = vld [vmem:[%s676_s3 + $0x98] sm:$0xff]  ;;  %v159_v2 = vld [vmem:[%s676_s3 + $0x88] sm:$0xff]  ;;  %v158_v3 = vld [vmem:[%s676_s3 + $0x80] sm:$0xff] }
  0x1b   :  { %87 = vmatpush.msra.mxu0 %v46_v22  ;;  %213 = vmatpush.msra.mxu3 %v167_v46  ;;  %v70_v4 = vld [vmem:[#allocation2] sm:$0x3] }
  0x1c   :  { %116 = vmatpush.msra.mxu1 %v47_v23  ;;  %185 = vmatpush.msra.mxu2 %v150_v48  ;;  %v72_v5 = vperm.slane %v70_v4, 0  ;;  %v73_v6 = vperm.slane %v70_v4, 1  ;;  %v367_v31 = vld [vmem:[%s677_s4] ss:$0 sm:$0xff]  ;;  %s412_s4 = smov 8  }
  0x1d   :  { %88 = vmatpush.msra.mxu0 %v44_v24  ;;  %214 = vmatpush.msra.mxu3 %v166_v49 }
  0x1e   :  { %117 = vmatpush.msra.mxu1 %v45_v25  ;;  %186 = vmatpush.msra.mxu2 %v149_v50 }
  0x1f   :  { %89 = vmatpush.msra.mxu0 %v42_v26  ;;  %215 = vmatpush.msra.mxu3 %v165_v51 }
  0x20   :  { %118 = vmatpush.msra.mxu1 %v43_v27  ;;  %187 = vmatpush.msra.mxu2 %v148_v52 }
  0x21   :  { %90 = vmatpush.msra.mxu0 %v40_v32  ;;  %216 = vmatpush.msra.mxu3 %v164_v53 }
  0x22   :  { %119 = vmatpush.msra.mxu1 %v41_v33  ;;  %188 = vmatpush.msra.mxu2 %v147_v54 }
  0x23   :  { %91 = vmatpush.msra.mxu0 %v38_v36  ;;  %217 = vmatpush.msra.mxu3 %v163_v55 }
  0x24   :  { %120 = vmatpush.msra.mxu1 %v39_v37  ;;  %92 = vmatmul.f32.vlgmr.msra.gmra.mxu0 %v34_v38 }
  0x25   :  { %121 = vmatmul.f32.vlgmr.msra.gmra.mxu1 %v34_v38  ;;  %189 = vmatpush.msra.mxu2 %v146_v57 }
  0x26   :  { %218 = vmatpush.msra.mxu3 %v162_v58 }
  0x27   :  { %190 = vmatpush.msra.mxu2 %v145_v59 }
  0x28   :  { %219 = vmatpush.msra.mxu3 %v161_v62 }
  0x29   :  { %191 = vmatpush.msra.mxu2 %v144_v61 }
  0x2a   :  { %220 = vmatpush.msra.mxu3 %v160_v0 }
  0x2b   :  { %192 = vmatpush.msra.mxu2 %v143_v63 }
  0x2c   :  { %95 = vmatmul.f32.gmra.mxu0 %v35_v47  ;;  %221 = vmatpush.msra.mxu3 %v159_v2 }
  0x2d   :  { %124 = vmatmul.f32.gmra.mxu1 %v35_v47  ;;  %193 = vmatpush.msra.mxu2 %v142_v1 }
  0x2e   :  { %222 = vmatpush.msra.mxu3 %v158_v3 }
  0x34   :  { %98 = vmatmul.f32.gmra.mxu0 %v36_v56 }
  0x35   :  { %127 = vmatmul.f32.gmra.mxu1 %v36_v56 }
  0x3c   :  { %101 = vmatmul.f32.gmra.mxu0 %v37_v60 }
  0x3d   :  { %130 = vmatmul.f32.gmra.mxu1 %v37_v60 }
  0xa1   :  { %v93_v7 = vpop.f32.mrf.mxu0 }
  0xa2   :  { %v122_v8 = vpop.f32.mrf.mxu1  ;;  %v94_v9 = vadd.f32 %v93_v7, %v72_v5 }
  0xa3   :  { %v123_v10 = vadd.f32 %v122_v8, %v73_v6 }
  0xa4   :  { %v134_v11 = vmax.f32 %v94_v9, 0.0 }
  0xa5   :  { %v135_v12 = vmax.f32 %v123_v10, 0.0 }
  0xa6   :  { %194 = vmatmul.f32.vlgmr.msra.gmra.mxu2 %v134_v11 }
  0xa7   :  { %223 = vmatmul.f32.vlgmr.msra.gmra.mxu3 %v135_v12 }
  0xa9   :  { %v96_v13 = vpop.f32.mrf.mxu0 }
  0xaa   :  { %v125_v14 = vpop.f32.mrf.mxu1  ;;  %v97_v15 = vadd.f32 %v96_v13, %v72_v5 }
  0xab   :  { %v126_v16 = vadd.f32 %v125_v14, %v73_v6 }
  0xac   :  { %v136_v17 = vmax.f32 %v97_v15, 0.0 }
  0xad   :  { %v137_v18 = vmax.f32 %v126_v16, 0.0 }
  0xae   :  { %197 = vmatmul.f32.gmra.mxu2 %v136_v17 }
  0xaf   :  { %226 = vmatmul.f32.gmra.mxu3 %v137_v18 }
  0xb1   :  { %v99_v19 = vpop.f32.mrf.mxu0 }
  0xb2   :  { %v128_v20 = vpop.f32.mrf.mxu1  ;;  %v100_v21 = vadd.f32 %v99_v19, %v72_v5 }
  0xb3   :  { %v129_v22 = vadd.f32 %v128_v20, %v73_v6 }
  0xb4   :  { %v138_v23 = vmax.f32 %v100_v21, 0.0 }
  0xb5   :  { %v139_v24 = vmax.f32 %v129_v22, 0.0 }
  0xb6   :  { %200 = vmatmul.f32.gmra.mxu2 %v138_v23 }
  0xb7   :  { %229 = vmatmul.f32.gmra.mxu3 %v139_v24 }
  0xb9   :  { %v102_v25 = vpop.f32.mrf.mxu0 }
  0xba   :  { %v131_v26 = vpop.f32.mrf.mxu1  ;;  %v103_v27 = vadd.f32 %v102_v25, %v72_v5 }
  0xbb   :  { %v132_v28 = vadd.f32 %v131_v26, %v73_v6 }
  0xbc   :  { %v140_v29 = vmax.f32 %v103_v27, 0.0 }
  0xbd   :  { %v141_v30 = vmax.f32 %v132_v28, 0.0 }
  0xbe   :  { %203 = vmatmul.f32.gmra.mxu2 %v140_v29 }
  0xbf   :  { %232 = vmatmul.f32.gmra.mxu3 %v141_v30 }
 0x129   :  { %v195_v32 = vpop.f32.mrf.mxu2 }
 0x12a   :  { %v224_v33 = vpop.f32.mrf.mxu3  ;;  %v196_v34 = vadd.f32 %v367_v31, %v195_v32 }
 0x12c   :  { %v225_v35 = vadd.f32 %v224_v33, %v196_v34 }
 0x12e   :  { %240 = vrot.lane.b32.xlu0 %v225_v35, %s411_s1 }
 0x131   :  { %v198_v36 = vpop.f32.mrf.mxu2 }
 0x132   :  { %v227_v37 = vpop.f32.mrf.mxu3  ;;  %v199_v38 = vadd.f32 %v367_v31, %v198_v36 }
 0x134   :  { %v228_v39 = vadd.f32 %v227_v37, %v199_v38 }
 0x136   :  { %242 = vrot.lane.b32.xlu0 %v228_v39, %s411_s1 }
 0x139   :  { %v201_v40 = vpop.f32.mrf.mxu2 }
 0x13a   :  { %v230_v41 = vpop.f32.mrf.mxu3  ;;  %v202_v42 = vadd.f32 %v367_v31, %v201_v40 }
 0x13c   :  { %v231_v43 = vadd.f32 %v230_v41, %v202_v42 }
 0x13e   :  { %244 = vrot.lane.b32.xlu1 %v231_v43, %s411_s1 }
 0x141   :  { %v204_v44 = vpop.f32.mrf.mxu2 }
 0x142   :  { %v233_v45 = vpop.f32.mrf.mxu3  ;;  %v205_v46 = vadd.f32 %v367_v31, %v204_v44 }
 0x144   :  { %v234_v47 = vadd.f32 %v233_v45, %v205_v46 }
 0x146   :  { %246 = vrot.lane.b32.xlu1 %v234_v47, %s411_s1 }
 0x1a0   :  { %v241_v48 = vpop.permute.xlu0 %240 }
 0x1a1   :  { %v252_v49 = vsub.f32 %v225_v35, %v241_v48 }
 0x1a3   :  { %v256_v50 = vmul.f32 1.442695, %v252_v49 }
 0x1a5   :  { %368 = vpow2.f32 %v256_v50 }
 0x1a8   :  { %v243_v51 = vpop.permute.xlu0 %242 }
 0x1a9   :  { %v253_v52 = vsub.f32 %v228_v39, %v243_v51 }
 0x1ab   :  { %v369_v53 = vpop.eup %368  ;;  %v258_v54 = vmul.f32 1.442695, %v253_v52 }
 0x1ac   :  { %v264_v55 = vadd.f32 1.0, %v369_v53 }
 0x1ad   :  { %370 = vpow2.f32 %v258_v54 }
 0x1ae   :  { %372 = vrcp.f32 %v264_v55  ;;  %v279_v1 = vand.u32 2147483648, %v264_v55  ;;  %v277_v4 = vand.u32 2147483647, %v264_v55  ;;  %vm273_vm1 = vweird.f32 %v264_v55 }
 0x1b0   :  { %v245_v56 = vpop.permute.xlu1 %244  ;;  %v280_v10 = vor.u32 1.1754944e-38, %v279_v1  ;;  %vm278_vm3 = vcmp.eq.f32.partialorder %v277_v4, 8.507059e+37 }
 0x1b1   :  { %v254_v57 = vsub.f32 %v231_v43, %v245_v56 }
 0x1b3   :  { %v371_v58 = vpop.eup %370  ;;  %v260_v59 = vmul.f32 1.442695, %v254_v57 }
 0x1b4   :  { %v373_v60 = vpop.eup %372  ;;  %v265_v61 = vadd.f32 1.0, %v371_v58 }
 0x1b5   :  { %374 = vpow2.f32 %v260_v59  ;;  %v269_v62 = vmul.f32 %v373_v60, %v264_v55  ;;  %vm274_vm0 = vweird.f32 %v373_v60 }
 0x1b6   :  { %376 = vrcp.f32 %v265_v61  ;;  %vm275_vm2 = vmor %vm273_vm1, %vm274_vm0  ;;  %v294_v15 = vand.u32 2147483648, %v265_v61  ;;  %v292_v17 = vand.u32 2147483647, %v265_v61  ;;  %vm288_vm5 = vweird.f32 %v265_v61 }
 0x1b7   :  { %v270_v63 = vsub.f32 1.0, %v269_v62  ;;  %vm348_vm0 = vcmask 64512   ;;  %vm353_vm1 = vcmask 130048  }
 0x1b8   :  { %v247_v0 = vpop.permute.xlu1 %246  ;;  %v295_v22 = vor.u32 1.1754944e-38, %v294_v15  ;;  %vm293_vm7 = vcmp.eq.f32.partialorder %v292_v17, 8.507059e+37 }
 0x1b9   :  { %v255_v2 = vsub.f32 %v234_v47, %v247_v0  ;;  %v271_v3 = vmul.f32 %v373_v60, %v270_v63 }
 0x1bb   :  { %v375_v5 = vpop.eup %374  ;;  %v262_v6 = vmul.f32 1.442695, %v255_v2  ;;  %v272_v7 = vadd.f32 %v373_v60, %v271_v3 }
 0x1bc   :  { %v377_v8 = vpop.eup %376  ;;  %v266_v9 = vadd.f32 1.0, %v375_v5 }
 0x1bd   :  { %378 = vpow2.f32 %v262_v6  ;;  %v276_v11 = vsel %vm275_vm2, %v373_v60, %v272_v7  ;;  %v284_v12 = vmul.f32 %v377_v8, %v265_v61  ;;  %vm289_vm4 = vweird.f32 %v377_v8 }
 0x1be   :  { %380 = vrcp.f32 %v266_v9  ;;  %v281_v13 = vsel %vm278_vm3, %v280_v10, %v276_v11  ;;  %vm290_vm6 = vmor %vm288_vm5, %vm289_vm4  ;;  %v309_v27 = vand.u32 2147483648, %v266_v9  ;;  %v307_v29 = vand.u32 2147483647, %v266_v9 }
 0x1bf   :  { %336 = vrot.lane.b32.xlu2 %v281_v13, %s412_s4  ;;  %v285_v14 = vsub.f32 1.0, %v284_v12  ;;  %vm303_vm9 = vweird.f32 %v266_v9  ;;  %v328_v44 = vsub.f32 1.0, %v281_v13  ;;  %vm357_vm2 = vcmask 122880  }
 0x1c0   :  { %v310_v32 = vor.u32 1.1754944e-38, %v309_v27  ;;  %vm308_vm11 = vcmp.eq.f32.partialorder %v307_v29, 8.507059e+37 }
 0x1c1   :  { %v286_v16 = vmul.f32 %v377_v8, %v285_v14 }
 0x1c3   :  { %v379_v18 = vpop.eup %378  ;;  %v287_v19 = vadd.f32 %v377_v8, %v286_v16 }
 0x1c4   :  { %v381_v20 = vpop.eup %380  ;;  %v267_v21 = vadd.f32 1.0, %v379_v18 }
 0x1c5   :  { %v291_v23 = vsel %vm290_vm6, %v377_v8, %v287_v19  ;;  %v299_v24 = vmul.f32 %v381_v20, %v266_v9  ;;  %vm304_vm8 = vweird.f32 %v381_v20 }
 0x1c6   :  { %382 = vrcp.f32 %v267_v21  ;;  %v296_v25 = vsel %vm293_vm7, %v295_v22, %v291_v23  ;;  %vm305_vm10 = vmor %vm303_vm9, %vm304_vm8  ;;  %v324_v37 = vand.u32 2147483648, %v267_v21  ;;  %v322_v39 = vand.u32 2147483647, %v267_v21 }
 0x1c7   :  { %338 = vrot.lane.b32.xlu2 %v296_v25, %s412_s4  ;;  %v300_v26 = vsub.f32 1.0, %v299_v24  ;;  %vm318_vm13 = vweird.f32 %v267_v21  ;;  %v329_v47 = vsub.f32 1.0, %v296_v25 }
 0x1c8   :  { %v325_v41 = vor.u32 1.1754944e-38, %v324_v37  ;;  %vm323_vm15 = vcmp.eq.f32.partialorder %v322_v39, 8.507059e+37 }
 0x1c9   :  { %v301_v28 = vmul.f32 %v381_v20, %v300_v26 }
 0x1cb   :  { %v302_v30 = vadd.f32 %v381_v20, %v301_v28 }
 0x1cc   :  { %v383_v31 = vpop.eup %382 }
 0x1cd   :  { %v306_v33 = vsel %vm305_vm10, %v381_v20, %v302_v30  ;;  %v314_v34 = vmul.f32 %v383_v31, %v267_v21  ;;  %vm319_vm12 = vweird.f32 %v383_v31 }
 0x1ce   :  { %v311_v35 = vsel %vm308_vm11, %v310_v32, %v306_v33  ;;  %vm320_vm14 = vmor %vm318_vm13, %vm319_vm12 }
 0x1cf   :  { %340 = vrot.lane.b32.xlu0 %v311_v35, %s412_s4  ;;  %v315_v36 = vsub.f32 1.0, %v314_v34  ;;  %v330_v50 = vsub.f32 1.0, %v311_v35 }
 0x1d1   :  { %v316_v38 = vmul.f32 %v383_v31, %v315_v36 }
 0x1d3   :  { %v317_v40 = vadd.f32 %v383_v31, %v316_v38 }
 0x1d5   :  { %v321_v42 = vsel %vm320_vm14, %v383_v31, %v317_v40 }
 0x1d6   :  { %v326_v43 = vsel %vm323_vm15, %v325_v41, %v321_v42 }
 0x1d7   :  { %342 = vrot.lane.b32.xlu1 %v326_v43, %s412_s4  ;;  %v331_v53 = vsub.f32 1.0, %v326_v43 }
 0x219   :  { %v337_v45 = vpop.permute.xlu2 %336 }
 0x21a   :  { %v349_v46 = vsel %vm348_vm0, %v328_v44, %v337_v45 }
 0x21b   :  { %354 = vst.msk [vmem:[%s678_s5] sm:$0xff] %vm353_vm1, %v349_v46 }
 0x221   :  { %v339_v48 = vpop.permute.xlu2 %338 }
 0x222   :  { %v350_v49 = vsel %vm348_vm0, %v329_v47, %v339_v48 }
 0x223   :  { %355 = vst.msk [vmem:[%s678_s5 + $0x8] sm:$0xff] %vm353_vm1, %v350_v49 }
 0x241   :  { %v341_v51 = vpop.permute.xlu0 %340 }
 0x242   :  { %v351_v52 = vsel %vm348_vm0, %v330_v50, %v341_v51 }
 0x243   :  { %356 = vst.msk [vmem:[%s678_s5 + $0x10] sm:$0xff] %vm353_vm1, %v351_v52 }
 0x249   :  { %v343_v54 = vpop.permute.xlu1 %342 }
 0x24a   :  { %v352_v55 = vsel %vm348_vm0, %v331_v53, %v343_v54 }
 0x24b   :  { %358 = vst.msk [vmem:[%s678_s5 + $0x18] sm:$0x1] %vm357_vm2, %v352_v55 }
 0x24c   :  { %363 = vsyncpa [#allocation3], 1 }

</bundles_post_ra>
